<compile_context>
chip_gen: v7x
topology: tpu7x:2x2x1
jax: 0.10.0
libtpu: 0.0.40
codegen_flags: <defaults>
</compile_context>

<pallas_src>
import functools

import jax
import jax.numpy as jnp
from jax.experimental import pallas as pl
from jax.experimental.pallas import tpu as pltpu


# ---------------------------------------------------------------------------
# Kernels
# ---------------------------------------------------------------------------
def _o1_kernel(x_ref, w_ref, b_ref, o_ref, *, approx, lane_dense):
    """output_dim == 1 path: per-row dot product without the MXU.

    x_ref: (TB, D) f32 VMEM (streamed batch tile)
    w_ref: (1, D)  f32 VMEM (resident across grid steps)
    b_ref: (1,)    f32 SMEM (scalar bias)
    o_ref: (1, TB) f32 VMEM if lane_dense else (TB, 1)
    """
    # VPU multiply + XLU cross-lane reduce, f32 accumulate.
    z = jnp.sum(x_ref[...] * w_ref[...], axis=-1, keepdims=True)      # (TB, 1)
    z = z + b_ref[0]
    # sigmoid(z) = 1 / (1 + exp(-z)); exp and the (approximate) reciprocal
    # both run on the EUP slot, so the epilogue is essentially free.
    sig = pl.reciprocal(1.0 + jnp.exp(-z), approx=approx)
    if lane_dense:
        # (TB, 1) -> (1, TB): store a lane-dense slab (unmasked stores).
        o_ref[...] = sig.reshape(o_ref.shape).astype(o_ref.dtype)
    else:
        o_ref[...] = sig.astype(o_ref.dtype)


def _mxu_kernel(x_ref, w_ref, b_ref, o_ref, *, approx):
    """General output_dim path: batch/O tiled MXU matmul + bias + sigmoid.

    x_ref: (TB, D)  w_ref: (D, TO)  b_ref: (1, TO)  o_ref: (TB, TO)
    """
    z = jnp.dot(x_ref[...], w_ref[...], preferred_element_type=jnp.float32)
    z = z + b_ref[...]
    o_ref[...] = pl.reciprocal(1.0 + jnp.exp(-z), approx=approx).astype(o_ref.dtype)
    # TODO(synk): for MXU-sized D/O, cast x/w to bf16 (keeping the f32
    # accumulate via preferred_element_type) to double MXU throughput and
    # halve DMA bytes; kept f32 here for parity with the PyTorch module.


# ---------------------------------------------------------------------------
# Wrappers
# ---------------------------------------------------------------------------
def _batch_tile(B):
    # Rows per grid step: full batch for small B (full-extent blocks are always
    # legal), otherwise 512 (multiple of 8 f32 sublanes and of 128 lanes, in
    # the measured 256-1024 sweet spot for pipelined tiles).
    return B if B <= 512 else 512


def _vmem_limit(tile_bytes):
    # Explicit scoped-VMEM budget with headroom; stays well under v7x's
    # 64 MiB physical (32 MiB scoped default).
    return int(min(32 * 1024 * 1024, max(8 * 1024 * 1024, 4 * tile_bytes)))


def _forward_o1(x, weight, bias, *, approx, lane_dense):
    B, D = x.shape
    w_row = weight.reshape(1, D).astype(jnp.float32)   # PyTorch weight is already (1, D)
    b = bias.reshape(1).astype(jnp.float32)

    TB = _batch_tile(B)
    Bp = TB * pl.cdiv(B, TB)
    if Bp != B:
        x = jnp.pad(x, ((0, Bp - B), (0, 0)))
    grid = (Bp // TB,)

    # Double-buffered x/out tiles + resident weight row.
    tile_bytes = 2 * (TB * D + TB) * 4 + D * 4

    if lane_dense:
        out_shape = jax.ShapeDtypeStruct((1, Bp), jnp.float32)
        out_spec = pl.BlockSpec((1, TB), lambda i: (0, i))
    else:
        out_shape = jax.ShapeDtypeStruct((Bp, 1), jnp.float32)
        out_spec = pl.BlockSpec((TB, 1), lambda i: (i, 0))

    out = pl.pallas_call(
        functools.partial(_o1_kernel, approx=approx, lane_dense=lane_dense),
        out_shape=out_shape,
        grid=grid,
        in_specs=[
            pl.BlockSpec((TB, D), lambda i: (i, 0)),               # x: streamed batch tiles
            pl.BlockSpec((1, D), lambda i: (0, 0)),                # weight row: VMEM-resident
            pl.BlockSpec(memory_space=pltpu.MemorySpace.SMEM),     # scalar bias in SMEM
        ],
        out_specs=out_spec,
        compiler_params=pltpu.CompilerParams(
            dimension_semantics=("parallel",),     # shards batch across v7x's 2 TCs
            vmem_limit_bytes=_vmem_limit(tile_bytes),
        ),
    )(x.astype(jnp.float32), w_row, b)

    # Force completion here so any lowering/runtime issue surfaces inside the
    # caller's fallback handling.
    out = jax.block_until_ready(out)
    if lane_dense:
        return out.reshape(-1)[:B].reshape(B, 1)
    return out[:B]


def _forward_general(x, weight, bias, *, approx):
    B, D = x.shape
    O = weight.shape[0]
    w = jnp.transpose(weight).astype(jnp.float32)   # (D, O): kernel computes x @ w
    b = bias.reshape(1, O).astype(jnp.float32)

    TB = _batch_tile(B)
    Bp = TB * pl.cdiv(B, TB)
    if Bp != B:
        x = jnp.pad(x, ((0, Bp - B), (0, 0)))

    # Tile O in multiples of 128 (MXU/lane width) when it divides evenly.
    if O % 128 == 0:
        TO = min(O, 512)
        while O % TO:
            TO -= 128
    else:
        TO = O
    grid = (Bp // TB, O // TO)

    tile_bytes = 2 * (TB * D + TB * TO + D * TO + TO) * 4
    out = pl.pallas_call(
        functools.partial(_mxu_kernel, approx=approx),
        out_shape=jax.ShapeDtypeStruct((Bp, O), jnp.float32),
        grid=grid,
        in_specs=[
            pl.BlockSpec((TB, D), lambda i, j: (i, 0)),
            pl.BlockSpec((D, TO), lambda i, j: (0, j)),
            pl.BlockSpec((1, TO), lambda i, j: (0, j)),
        ],
        out_specs=pl.BlockSpec((TB, TO), lambda i, j: (i, j)),
        compiler_params=pltpu.CompilerParams(
            dimension_semantics=("parallel", "parallel"),
            vmem_limit_bytes=_vmem_limit(tile_bytes),
        ),
    )(x.astype(jnp.float32), w, b)
    return out[:B]


def elasticnet_forward(x, weight, bias, *, approx=True):
    """ElasticNet forward: sigmoid(x @ weight.T + bias).

    x: (B, D); weight: (O, D) (PyTorch nn.Linear layout); bias: (O,).
    Returns (B, O) float32.
    """
    O = weight.shape[0]
    if O == 1:
        try:
            return _forward_o1(x, weight, bias, approx=approx, lane_dense=True)
        except Exception:
            # TODO(synk): the (TB,1)->(1,TB) in-register relayout used for the
            # lane-dense output slab may be unsupported on some Mosaic
            # toolchains; fall back to a sublane-major (B, 1) output layout.
            return _forward_o1(x, weight, bias, approx=approx, lane_dense=False)
    return _forward_general(x, weight, bias, approx=approx)


# Regularization helpers from the PyTorch module (not part of forward; plain
# jnp reductions — no kernel needed).
def cal_l1_loss(w):
    return jnp.abs(w).sum()


def cal_l2_loss(w):
    return jnp.square(w).sum()


def elasticnet_ref(x, weight, bias):
    # HIGHEST-precision reference so the check is not polluted by XLA's
    # reduced-precision default matmul passes on TPU.
    z = jax.lax.dot_general(x, weight, (((1,), (1,)), ((), ())),
                            precision=jax.lax.Precision.HIGHEST)
    return jax.nn.sigmoid(z + bias[None, :])


if __name__ == "__main__":
    key = jax.random.PRNGKey(0)

    # --- Small shapes consistent with the module: ElasticNet(input_dim=32) ---
    B, D, O = 8, 32, 1
    kx, kw, kb = jax.random.split(key, 3)
    x = jax.random.normal(kx, (B, D), jnp.float32)
    # kaiming_normal_ on weight: std = sqrt(2 / fan_in)
    weight = jax.random.normal(kw, (O, D), jnp.float32) * jnp.sqrt(2.0 / D)
    # nn.Linear default bias init: U(-1/sqrt(fan_in), 1/sqrt(fan_in))
    bound = 1.0 / float(D) ** 0.5
    bias = jax.random.uniform(kb, (O,), jnp.float32, -bound, bound)

    out = elasticnet_forward(x, weight, bias, approx=False)   # exact epilogue: tight check
    out = jax.block_until_ready(out)
    assert out.shape == (B, O)
    assert jnp.allclose(out, elasticnet_ref(x, weight, bias), atol=1e-5, rtol=1e-5)
    _reg = jax.block_until_ready(cal_l1_loss(weight) + cal_l2_loss(weight))

    # --- Larger batch: exercises batch tiling / pipelining + approx epilogue ---
    B2, D2 = 2048, 256
    x2 = jax.random.normal(jax.random.PRNGKey(1), (B2, D2), jnp.float32)
    w2 = jax.random.normal(jax.random.PRNGKey(2), (1, D2), jnp.float32) * jnp.sqrt(2.0 / D2)
    b2 = jax.random.uniform(jax.random.PRNGKey(3), (1,), jnp.float32, -0.1, 0.1)
    out2 = jax.block_until_ready(elasticnet_forward(x2, w2, b2, approx=True))
    assert out2.shape == (B2, 1)
    # Loose tolerance only because of the approximate EUP reciprocal in the
    # sigmoid epilogue; the exact-path check above anchors correctness.
    assert jnp.allclose(out2, elasticnet_ref(x2, w2, b2), atol=1e-2, rtol=1e-2)

    # --- output_dim > 1: general MXU path ---
    B3, D3, O3 = 256, 128, 8
    x3 = jax.random.normal(jax.random.PRNGKey(4), (B3, D3), jnp.float32)
    w3 = jax.random.normal(jax.random.PRNGKey(5), (O3, D3), jnp.float32) * jnp.sqrt(2.0 / D3)
    b3 = jax.random.uniform(jax.random.PRNGKey(6), (O3,), jnp.float32, -0.1, 0.1)
    out3 = jax.block_until_ready(elasticnet_forward(x3, w3, b3, approx=False))
    assert out3.shape == (B3, O3)
    # Tolerance covers possible rounding differences between the in-kernel MXU
    # f32 matmul passes and the HIGHEST-precision XLA reference.
    assert jnp.allclose(out3, elasticnet_ref(x3, w3, b3), atol=5e-3, rtol=5e-3)

    print("KERNEL_OK")
</pallas_src>

<mosaic_0001>
module attributes {stable_mosaic.version = 11 : i64} {
  func.func @_o1_kernel(%arg0: i32, %arg1: memref<8x32xf32, #tpu.memory_space<vmem>>, %arg2: memref<1x32xf32, #tpu.memory_space<vmem>>, %arg3: memref<1xf32, #tpu.memory_space<smem>>, %arg4: memref<1x8xf32, #tpu.memory_space<vmem>>) attributes {dimension_semantics = [#tpu.dimension_semantics<parallel>], iteration_bounds = array<i64: 1>, scalar_prefetch = 0 : i64, scratch_operands = 0 : i64, tpu.core_type = #tpu.core_type<tc>, window_params = [{transform_indices = @transform_0, window_bounds = array<i64: 8, 32>}, {pipeline_mode = #tpu.pipeline_mode<synchronous>, transform_indices = @transform_1, window_bounds = array<i64: 1, 32>}, {transform_indices = @transform_2, window_bounds = array<i64: 1>}, {transform_indices = @transform_3, window_bounds = array<i64: 1, 8>}]} {
    %c0 = arith.constant 0 : index
    %c0_0 = arith.constant 0 : index
    %0 = vector.load %arg1[%c0, %c0_0] : memref<8x32xf32, #tpu.memory_space<vmem>>, vector<8x32xf32>
    %c0_1 = arith.constant 0 : index
    %c0_2 = arith.constant 0 : index
    %1 = vector.load %arg2[%c0_1, %c0_2] : memref<1x32xf32, #tpu.memory_space<vmem>>, vector<1x32xf32>
    %2 = vector.broadcast %1 : vector<1x32xf32> to vector<8x32xf32>
    %3 = arith.mulf %0, %2 : vector<8x32xf32>
    %cst = arith.constant dense<0.000000e+00> : vector<8xf32>
    %4 = vector.multi_reduction <add>, %3, %cst [1] : vector<8x32xf32> to vector<8xf32>
    %5 = vector.shape_cast %4 : vector<8xf32> to vector<8x1xf32>
    %c0_3 = arith.constant 0 : index
    %6 = memref.load %arg3[%c0_3] : memref<1xf32, #tpu.memory_space<smem>>
    %7 = vector.broadcast %6 : f32 to vector<8x1xf32>
    %8 = arith.addf %5, %7 : vector<8x1xf32>
    %cst_4 = arith.constant 0.000000e+00 : f32
    %9 = vector.broadcast %cst_4 : f32 to vector<8x1xf32>
    %10 = arith.subf %9, %8 : vector<8x1xf32>
    %11 = math.exp %10 : vector<8x1xf32>
    %cst_5 = arith.constant 1.000000e+00 : f32
    %12 = vector.broadcast %cst_5 : f32 to vector<8x1xf32>
    %13 = arith.addf %12, %11 : vector<8x1xf32>
    %14 = tpu.reciprocal %13 : vector<8x1xf32> -> vector<8x1xf32>
    %15 = vector.shape_cast %14 : vector<8x1xf32> to vector<1x8xf32>
    %c0_6 = arith.constant 0 : index
    %c0_7 = arith.constant 0 : index
    %16 = vector.load %arg4[%c0_6, %c0_7] : memref<1x8xf32, #tpu.memory_space<vmem>>, vector<1x8xf32>
    tpu.vector_store %arg4[%c0_6, %c0_7], %15 {strides = array<i32>} : memref<1x8xf32, #tpu.memory_space<vmem>>, vector<1x8xf32>,
    return
  }
  func.func @transform_0(%arg0: i32) -> (i32, i32) {
    %c0_i32 = arith.constant 0 : i32
    %c0_i32_0 = arith.constant 0 : i32
    return %arg0, %c0_i32 : i32, i32
  }
  func.func @transform_1(%arg0: i32) -> (i32, i32) {
    %c0_i32 = arith.constant 0 : i32
    %c0_i32_0 = arith.constant 0 : i32
    %c0_i32_1 = arith.constant 0 : i32
    return %c0_i32, %c0_i32_0 : i32, i32
  }
  func.func @transform_2(%arg0: i32) -> i32 {
    %c0_i32 = arith.constant 0 : i32
    %c0_i32_0 = arith.constant 0 : i32
    return %c0_i32 : i32
  }
  func.func @transform_3(%arg0: i32) -> (i32, i32) {
    %c0_i32 = arith.constant 0 : i32
    %c0_i32_0 = arith.constant 0 : i32
    return %c0_i32, %arg0 : i32, i32
  }
}

module attributes {stable_mosaic.version = 11 : i64} {
  func.func @_o1_kernel(%arg0: i32, %arg1: memref<8x32xf32, #tpu.memory_space<vmem>>, %arg2: memref<1x32xf32, #tpu.memory_space<vmem>>, %arg3: memref<1xf32, #tpu.memory_space<smem>>, %arg4: memref<8x1xf32, #tpu.memory_space<vmem>>) attributes {dimension_semantics = [#tpu.dimension_semantics<parallel>], iteration_bounds = array<i64: 1>, scalar_prefetch = 0 : i64, scratch_operands = 0 : i64, tpu.core_type = #tpu.core_type<tc>, window_params = [{transform_indices = @transform_0, window_bounds = array<i64: 8, 32>}, {pipeline_mode = #tpu.pipeline_mode<synchronous>, transform_indices = @transform_1, window_bounds = array<i64: 1, 32>}, {transform_indices = @transform_2, window_bounds = array<i64: 1>}, {transform_indices = @transform_3, window_bounds = array<i64: 8, 1>}]} {
    %c0 = arith.constant 0 : index
    %c0_0 = arith.constant 0 : index
    %0 = vector.load %arg1[%c0, %c0_0] : memref<8x32xf32, #tpu.memory_space<vmem>>, vector<8x32xf32>
    %c0_1 = arith.constant 0 : index
    %c0_2 = arith.constant 0 : index
    %1 = vector.load %arg2[%c0_1, %c0_2] : memref<1x32xf32, #tpu.memory_space<vmem>>, vector<1x32xf32>
    %2 = vector.broadcast %1 : vector<1x32xf32> to vector<8x32xf32>
    %3 = arith.mulf %0, %2 : vector<8x32xf32>
    %cst = arith.constant dense<0.000000e+00> : vector<8xf32>
    %4 = vector.multi_reduction <add>, %3, %cst [1] : vector<8x32xf32> to vector<8xf32>
    %5 = vector.shape_cast %4 : vector<8xf32> to vector<8x1xf32>
    %c0_3 = arith.constant 0 : index
    %6 = memref.load %arg3[%c0_3] : memref<1xf32, #tpu.memory_space<smem>>
    %7 = vector.broadcast %6 : f32 to vector<8x1xf32>
    %8 = arith.addf %5, %7 : vector<8x1xf32>
    %cst_4 = arith.constant 0.000000e+00 : f32
    %9 = vector.broadcast %cst_4 : f32 to vector<8x1xf32>
    %10 = arith.subf %9, %8 : vector<8x1xf32>
    %11 = math.exp %10 : vector<8x1xf32>
    %cst_5 = arith.constant 1.000000e+00 : f32
    %12 = vector.broadcast %cst_5 : f32 to vector<8x1xf32>
    %13 = arith.addf %12, %11 : vector<8x1xf32>
    %14 = tpu.reciprocal %13 : vector<8x1xf32> -> vector<8x1xf32>
    %c0_6 = arith.constant 0 : index
    %c0_7 = arith.constant 0 : index
    %15 = vector.load %arg4[%c0_6, %c0_7] : memref<8x1xf32, #tpu.memory_space<vmem>>, vector<8x1xf32>
    tpu.vector_store %arg4[%c0_6, %c0_7], %14 {strides = array<i32>} : memref<8x1xf32, #tpu.memory_space<vmem>>, vector<8x1xf32>,
    return
  }
  func.func @transform_0(%arg0: i32) -> (i32, i32) {
    %c0_i32 = arith.constant 0 : i32
    %c0_i32_0 = arith.constant 0 : i32
    return %arg0, %c0_i32 : i32, i32
  }
  func.func @transform_1(%arg0: i32) -> (i32, i32) {
    %c0_i32 = arith.constant 0 : i32
    %c0_i32_0 = arith.constant 0 : i32
    %c0_i32_1 = arith.constant 0 : i32
    return %c0_i32, %c0_i32_0 : i32, i32
  }
  func.func @transform_2(%arg0: i32) -> i32 {
    %c0_i32 = arith.constant 0 : i32
    %c0_i32_0 = arith.constant 0 : i32
    return %c0_i32 : i32
  }
  func.func @transform_3(%arg0: i32) -> (i32, i32) {
    %c0_i32 = arith.constant 0 : i32
    %c0_i32_0 = arith.constant 0 : i32
    return %arg0, %c0_i32 : i32, i32
  }
}

</mosaic_0001>

<bundles_post_ra>
// kernel: tpu_custom_call.1
= control target key start
LH: loop header
LB: loop body
LE: loop exit
PB: predicated region body
PF: predicated region fallthrough
CT: control target
= control target key end

     0   :  { %9 = vsyncpa [#allocation4], 0  ;;  %s181_s0 = inlined_call_operand.hbm [shape: f32[8,32], index: 0, kind: input, shape index: {}]   ;;  %s182_s1 = inlined_call_operand.vmem [shape: f32[1,32], index: 1, kind: input, shape index: {}]   ;;  %s183_s2 = inlined_call_operand.<no memory space> [shape: f32[1], index: 2, kind: input, shape index: {}]   ;;  %s184_s3 = inlined_call_operand.hbm [shape: f32[1,8], index: 3, kind: output, shape index: {}]  }
   0x1   :  { %10 = vsyncpa [#allocation5], 0  ;;  %s129_s12 = smov [#allocation3]   ;;  %s81_s16 = scalar_lea.hbm %s181_s0, 128 }
   0x2   :  { %s17_s13 = sshll.u32 %s129_s12, 4  ;;  %p82_p0 = scmp.ne.s32.totalorder %s181_s0, %s81_s16  ;;  %s18_s13 = int_to_ptr.vmem [resolvable:$true] %s17_s13 }
   0x3   :  { %p85_p1 = scmp.lt.u32.totalorder %s81_s16, %s181_s0 }
   0x5   :  { %p87_p2 = pnand %p85_p1, %p82_p0 }
   0x7   :  { %90 = shalt.err (!%p87_p2)
}
   0x8   :  { %s91_s21 = scalar_lea.vmem %s18_s13, 128  ;;  %p96_p4 = scmp.lt.s32.totalorder %s18_s13, %s18_s13 }
   0x9   :  { %p92_p3 = scmp.ne.s32.totalorder %s18_s13, %s91_s21  ;;  %p97_p5 = scmp.lt.s32.totalorder %s91_s21, %s91_s21 }
   0xb   :  { %p98_p6 = por %p97_p5, %p96_p4 }
   0xd   :  { %p99_p7 = pnand %p98_p6, %p92_p3 }
   0xf   :  { %102 = shalt.err (!%p99_p7)
}
  0x10   :  { %20 = dma.hbm_to_vmem [thread:$0]  %s181_s0, 128, %s18_s13, [#allocation4]  }
  0x11   :  { %125 = dma.done.wait [#allocation4], 128  }
  0x12   :  { %126 = vsyncadd [#allocation4], 4294967168  ;;  %v28_v0 = vld [vmem:[#allocation3] sm:$0xff]  ;;  %vm37_vm0 = vcmask 261120   ;;  %v42_v4 = vstv %s183_s2  ;;  %v50_v11 = vlaneseq  ;;  %s130_s0 = smov [#allocation6]   ;;  %vm57_vm1 = vcmask 57344  }
  0x13   :  { %v74_v1 = vld [vmem:[%s182_s1] ss:$0 sm:$0xff]  ;;  %s65_s1 = sshll.u32 %s130_s0, 4  ;;  %s66_s1 = int_to_ptr.vmem [resolvable:$true] %s65_s1 }
  0x14   :  { %v36_v2 = vmul.f32 %v74_v1, %v28_v0  ;;  %v51_v12 = vand.u32 127, %v50_v11  ;;  %v53_v13 = vshrl.u32 %v50_v11, 7  ;;  %s103_s2 = scalar_lea.vmem %s66_s1, 16  ;;  %s107_s28 = scalar_lea.vmem %s66_s1, 32 }
  0x15   :  { %p104_p8 = scmp.ne.s32.totalorder %s66_s1, %s103_s2  ;;  %p108_p9 = scmp.lt.s32.totalorder %s66_s1, %s66_s1 }
  0x16   :  { %v38_v3 = vsel %vm37_vm0, %v36_v2, 0.0  ;;  %v54_v14 = vsub.s32 %v51_v12, %v53_v13  ;;  %p109_p10 = scmp.lt.s32.totalorder %s107_s28, %s103_s2 }
  0x17   :  { %39 = vadd.xlane.f32.xlu0 %v38_v3 }
  0x18   :  { %p110_p11 = por %p109_p10, %p108_p9 }
  0x1a   :  { %p111_p12 = pnand %p110_p11, %p104_p8 }
  0xa4   :  { %v40_v5 = vpop.xlane.xlu0 %39 }
  0xa5   :  { %v43_v6 = vadd.f32 %v42_v4, %v40_v5 }
  0xa7   :  { %v44_v7 = vsub.f32 0.0, %v43_v6 }
  0xa9   :  { %v45_v8 = vmul.f32 1.442695, %v44_v7 }
  0xab   :  { %77 = vpow2.f32 %v45_v8 }
  0xb5   :  { %v78_v9 = vpop.eup %77 }
  0xb6   :  { %v47_v10 = vadd.f32 1.0, %v78_v9 }
  0xb8   :  { %79 = vrcp.f32 %v47_v10 }
  0xc2   :  { %v80_v15 = vpop.eup %79 }
  0xc3   :  { %v55_v16 = vrot.slane %v80_v15, %v54_v14 }
  0xc5   :  { %58 = vst.msk [vmem:[#allocation6] sm:$0x1] %vm57_vm1, %v55_v16 }
  0xc6   :  { %114 = shalt.err (!%p111_p12)
}
  0xc7   :  { %s115_s4 = scalar_lea.hbm %s184_s3, 16 }
  0xc8   :  { %p116_p13 = scmp.ne.s32.totalorder %s184_s3, %s115_s4  ;;  %p119_p0 = scmp.lt.u32.totalorder %s115_s4, %s184_s3 }
  0xca   :  { %p121_p1 = pnand %p119_p0, %p116_p13 }
  0xcc   :  { %124 = shalt.err (!%p121_p1)
}
  0xcd   :  { %68 = dma.vmem_to_hbm [thread:$0]  %s66_s1, 16, %s184_s3, [#allocation5]  }
  0xce   :  { %127 = dma.done.wait [#allocation5], 16  }
  0xcf   :  { %128 = vsyncadd [#allocation5], 4294967280 }
  0xd0   :  { %72 = vsyncpa [#allocation4], 1 }
  0xd1   :  { %73 = vsyncpa [#allocation5], 1 }

// kernel: tpu_custom_call.1
= control target key start
LH: loop header
LB: loop body
LE: loop exit
PB: predicated region body
PF: predicated region fallthrough
CT: control target
= control target key end

     0   :  { %9 = vsyncpa [#allocation4], 0  ;;  %s85_s12 = smov [#allocation3]   ;;  %s127_s0 = inlined_call_operand.hbm [shape: f32[8,32], index: 0, kind: input, shape index: {}]   ;;  %s128_s1 = inlined_call_operand.vmem [shape: f32[1,32], index: 1, kind: input, shape index: {}]   ;;  %s129_s2 = inlined_call_operand.<no memory space> [shape: f32[1], index: 2, kind: input, shape index: {}]   ;;  %s130_s3 = inlined_call_operand.vmem [shape: f32[8,1], index: 3, kind: output, shape index: {}]  }
   0x1   :  { %s16_s13 = sshll.u32 %s85_s12, 4  ;;  %s61_s16 = scalar_lea.hbm %s127_s0, 128  ;;  %s17_s13 = int_to_ptr.vmem [resolvable:$true] %s16_s13 }
   0x2   :  { %p62_p0 = scmp.ne.s32.totalorder %s127_s0, %s61_s16  ;;  %p65_p1 = scmp.lt.u32.totalorder %s61_s16, %s127_s0 }
   0x4   :  { %p67_p2 = pnand %p65_p1, %p62_p0 }
   0x6   :  { %70 = shalt.err (!%p67_p2)
}
   0x7   :  { %s71_s21 = scalar_lea.vmem %s17_s13, 128  ;;  %p76_p4 = scmp.lt.s32.totalorder %s17_s13, %s17_s13 }
   0x8   :  { %p72_p3 = scmp.ne.s32.totalorder %s17_s13, %s71_s21  ;;  %p77_p5 = scmp.lt.s32.totalorder %s71_s21, %s71_s21 }
   0xa   :  { %p78_p6 = por %p77_p5, %p76_p4 }
   0xc   :  { %p79_p7 = pnand %p78_p6, %p72_p3 }
   0xe   :  { %82 = shalt.err (!%p79_p7)
}
   0xf   :  { %19 = dma.hbm_to_vmem [thread:$0]  %s127_s0, 128, %s17_s13, [#allocation4]  }
  0x10   :  { %83 = dma.done.wait [#allocation4], 128  }
  0x11   :  { %84 = vsyncadd [#allocation4], 4294967168  ;;  %v27_v0 = vld [vmem:[#allocation3] sm:$0xff]  ;;  %vm36_vm0 = vcmask 261120   ;;  %v41_v4 = vstv %s129_s2  ;;  %vm48_vm1 = vcmask 7168  }
  0x12   :  { %v55_v1 = vld [vmem:[%s128_s1] ss:$0 sm:$0xff] }
  0x13   :  { %v35_v2 = vmul.f32 %v55_v1, %v27_v0 }
  0x15   :  { %v37_v3 = vsel %vm36_vm0, %v35_v2, 0.0 }
  0x16   :  { %38 = vadd.xlane.f32.xlu0 %v37_v3 }
  0xa3   :  { %v39_v5 = vpop.xlane.xlu0 %38 }
  0xa4   :  { %v42_v6 = vadd.f32 %v41_v4, %v39_v5 }
  0xa6   :  { %v43_v7 = vsub.f32 0.0, %v42_v6 }
  0xa8   :  { %v44_v8 = vmul.f32 1.442695, %v43_v7 }
  0xaa   :  { %57 = vpow2.f32 %v44_v8 }
  0xb4   :  { %v58_v9 = vpop.eup %57 }
  0xb5   :  { %v46_v10 = vadd.f32 1.0, %v58_v9 }
  0xb7   :  { %59 = vrcp.f32 %v46_v10 }
  0xc1   :  { %v60_v11 = vpop.eup %59 }
  0xc2   :  { %49 = vst.msk [vmem:[%s130_s3] sm:$0xff] %vm48_vm1, %v60_v11 }
  0xc3   :  { %54 = vsyncpa [#allocation4], 1 }

</bundles_post_ra>
